<compile_context>
chip_gen: v7x
topology: tpu7x:2x2x1
jax: 0.10.0
libtpu: 0.0.40
codegen_flags: <defaults>
</compile_context>

<pallas_src>
import functools

import jax
import jax.numpy as jnp
from jax.experimental import pallas as pl
from jax.experimental.pallas import tpu as pltpu

NUM_CLASSES = 5
ANCHORS_PER_LEVEL = (4, 6)
CENTER_VAR = 0.1
SIZE_VAR = 0.2
CLS_PAD = 8            # class rows padded to 8 sublanes
NEG_LOGIT = -1e4       # bf16-safe "minus infinity" for padded class rows


def _round_up(x, m):
    return (x + m - 1) // m * m


def _split_tile(p, unit, max_tile):
    """Tile size along a (padded) extent p: multiple of `unit`, >=2 grid steps
    whenever possible (v7x has 2 TensorCores/chip), softly capped at max_tile."""
    if p <= unit:
        return p
    if p % (2 * unit) == 0:
        t = p // 2
        while t > max_tile and (t // 2) % unit == 0:
            t //= 2
        return t
    return unit


# ---------------------------------------------------------------------------
# Pallas kernels
# ---------------------------------------------------------------------------
def _mm_bias_act_kernel(x_ref, w_ref, b_ref, o_ref, *, act):
    # bf16 operands on the MXU, f32 accumulation + bias/activation epilogue,
    # store in the (bf16) output dtype -> half the output HBM bytes.
    acc = jnp.dot(x_ref[...], w_ref[...], preferred_element_type=jnp.float32)
    acc = acc + b_ref[...]
    if act == "relu":
        acc = jnp.maximum(acc, 0.0)
    o_ref[...] = acc.astype(o_ref.dtype)


def matmul_bias_act(x, wp, bp, *, act=None, cout=None,
                    out_dtype=jnp.bfloat16, max_tm=1024):
    """x: (M, K) bf16 with K == wp.shape[0] (K alignment handled upstream).
    wp: (K, Np) bf16, bp: (1, Np) f32, both pre-padded at init.
    Returns (M, cout) in out_dtype via one fused slice."""
    M, K = x.shape
    Kw, Np = wp.shape
    assert K == Kw, (K, Kw)
    Mp = _round_up(M, 128)
    if Mp != M:                       # no-op for every layer at these shapes
        x = jnp.pad(x, ((0, Mp - M), (0, 0)))
    tm = _split_tile(Mp, 128, max_tm)
    out = pl.pallas_call(
        functools.partial(_mm_bias_act_kernel, act=act),
        out_shape=jax.ShapeDtypeStruct((Mp, Np), out_dtype),
        grid=(Mp // tm,),
        in_specs=[
            pl.BlockSpec((tm, K), lambda i: (i, 0)),
            pl.BlockSpec((K, Np), lambda i: (0, 0)),
            pl.BlockSpec((1, Np), lambda i: (0, 0)),
        ],
        out_specs=pl.BlockSpec((tm, Np), lambda i: (i, 0)),
        compiler_params=pltpu.CompilerParams(
            dimension_semantics=("parallel",)),
    )(x, wp, bp)
    if cout is None:
        cout = Np
    return out[:M, :cout]


def _postproc_kernel(lg_ref, loc_ref, pr_ref, sc_ref, bx_ref, *, cv, sv):
    # Fused class softmax + prior-box decode on a lane-dense layout:
    # sublanes = classes / box coords, lanes = anchors. bf16 in, f32 math/out.
    lg = lg_ref[...].astype(jnp.float32)
    m = jnp.max(lg, axis=0, keepdims=True)
    e = jnp.exp(lg - m)
    s = jnp.sum(e, axis=0, keepdims=True)
    sc_ref[...] = e * pl.reciprocal(s)           # exact reciprocal on the EUP

    loc = loc_ref[...].astype(jnp.float32)       # rows 0..3 = (dx, dy, dw, dh)
    pr = pr_ref[...]                             # rows 0..3 = (cx, cy, w, h)
    cx = loc[0:1, :] * cv * pr[2:3, :] + pr[0:1, :]
    cy = loc[1:2, :] * cv * pr[3:4, :] + pr[1:2, :]
    w = jnp.exp(loc[2:3, :] * sv) * pr[2:3, :]
    h = jnp.exp(loc[3:4, :] * sv) * pr[3:4, :]
    # Single full-block (4, tl) store -- no zero-pad rows, unmasked vst.
    bx_ref[...] = jnp.concatenate(
        [cx - 0.5 * w, cy - 0.5 * h, cx + 0.5 * w, cy + 0.5 * h], axis=0)


def postprocess(cls_logits, bbox_pred, priors_t):
    """cls_logits: (N, A, C) bf16, bbox_pred: (N, A, 4) bf16,
    priors_t: (4, A_pad) f32 padded + transposed ONCE at init."""
    n, a_tot, c = cls_logits.shape
    a_pad = priors_t.shape[1]
    lg = jnp.pad(cls_logits, ((0, 0), (0, a_pad - a_tot), (0, CLS_PAD - c)),
                 constant_values=NEG_LOGIT)
    loc = jnp.pad(bbox_pred, ((0, 0), (0, a_pad - a_tot), (0, 0)))
    lg_t = lg.reshape(n * a_pad, CLS_PAD).T       # (8, N*A_pad) bf16
    loc_t = loc.reshape(n * a_pad, 4).T           # (4, N*A_pad) bf16
    scores_t, boxes_t = pl.pallas_call(
        functools.partial(_postproc_kernel, cv=CENTER_VAR, sv=SIZE_VAR),
        out_shape=(jax.ShapeDtypeStruct((CLS_PAD, n * a_pad), jnp.float32),
                   jax.ShapeDtypeStruct((4, n * a_pad), jnp.float32)),
        grid=(n,),                                 # one parallel step / image
        in_specs=[pl.BlockSpec((CLS_PAD, a_pad), lambda i: (0, i)),
                  pl.BlockSpec((4, a_pad), lambda i: (0, i)),
                  pl.BlockSpec((4, a_pad), lambda i: (0, 0))],   # prior reuse
        out_specs=(pl.BlockSpec((CLS_PAD, a_pad), lambda i: (0, i)),
                   pl.BlockSpec((4, a_pad), lambda i: (0, i))),
        compiler_params=pltpu.CompilerParams(
            dimension_semantics=("parallel",)),
    )(lg_t, loc_t, priors_t)
    scores = scores_t[:c].T.reshape(n, a_pad, c)[:, :a_tot]
    boxes = boxes_t.T.reshape(n, a_pad, 4)[:, :a_tot]
    return scores, boxes


# ---------------------------------------------------------------------------
# Conv = im2col (glue, bf16, K-aligned inside the concat) + fused Pallas matmul
# ---------------------------------------------------------------------------
def _extract_patches(x, kh, kw, stride, pad, k_pad):
    """x: (N, H, W, C) -> (N, OH, OW, kh*kw*C + k_pad); K-alignment zeros are
    appended inside the same concatenate (no separate pad pass)."""
    if pad:
        x = jnp.pad(x, ((0, 0), (pad, pad), (pad, pad), (0, 0)))
    N, Hp, Wp, C = x.shape
    oh = (Hp - kh) // stride + 1
    ow = (Wp - kw) // stride + 1
    pieces = []
    for i in range(kh):
        for j in range(kw):
            pieces.append(
                x[:, i:i + stride * oh:stride, j:j + stride * ow:stride, :])
    if k_pad:
        pieces.append(jnp.zeros((N, oh, ow, k_pad), x.dtype))
    return jnp.concatenate(pieces, axis=-1)


def conv2d(x, layer):
    """x: (N,H,W,Cin) bf16.  layer: pre-padded bf16 weight dict from init."""
    kh, kw = layer["kh"], layer["kw"]
    stride, pad = layer["stride"], layer["pad"]
    if x.dtype != jnp.bfloat16:       # only the raw input images pay a cast
        x = x.astype(jnp.bfloat16)
    if kh == 1 and kw == 1 and stride == 1 and pad == 0:
        patches = x                   # 1x1 conv: matmul straight on NHWC
    else:
        # TODO(synk): replace XLA-side im2col with in-kernel tap accumulation
        # over a VMEM-resident (haloed) feature map to kill the kh*kw HBM blowup.
        patches = _extract_patches(x, kh, kw, stride, pad, layer["k_pad"])
    N, OH, OW, K = patches.shape
    y = matmul_bias_act(patches.reshape(N * OH * OW, K),
                        layer["wp"], layer["bp"],
                        act=layer["act"], cout=layer["cout"])
    return y.reshape(N, OH, OW, layer["cout"])


# ---------------------------------------------------------------------------
# SSDDetector (synthetic, deterministic parameters)
# ---------------------------------------------------------------------------
def make_priors(fh, fw, num_anchors, base_scale):
    ys = (jnp.arange(fh, dtype=jnp.float32) + 0.5) / fh
    xs = (jnp.arange(fw, dtype=jnp.float32) + 0.5) / fw
    cy, cx = jnp.meshgrid(ys, xs, indexing="ij")
    cx = jnp.broadcast_to(cx[..., None], (fh, fw, num_anchors))
    cy = jnp.broadcast_to(cy[..., None], (fh, fw, num_anchors))
    scales = base_scale * (1.0 + 0.3 * jnp.arange(num_anchors, dtype=jnp.float32))
    w = jnp.broadcast_to(scales, (fh, fw, num_anchors))
    return jnp.stack([cx, cy, w, w], axis=-1).reshape(-1, 4)


def _out_size(h, k, s, p):
    return (h + 2 * p - k) // s + 1


def init_params(key, num_classes=NUM_CLASSES, image_size=32):
    def rnd(k, shape):
        return jax.random.normal(k, shape, jnp.float32) * 0.05

    def pack(w, b, stride, pad, act):
        # Flatten HWIO -> (KH*KW*Cin, Cout), pad Cout to 128, cast to bf16,
        # all ONCE at init.  3x3 convs align K to 128 via a k_pad that the
        # im2col concat absorbs; 1x1 convs keep K = Cin unpadded (32/64 here).
        kh, kw, cin, cout = w.shape
        kdim = kh * kw * cin
        kp = kdim if (kh == 1 and kw == 1) else _round_up(kdim, 128)
        np_ = _round_up(cout, 128)
        wp = jnp.pad(w.reshape(kdim, cout),
                     ((0, kp - kdim), (0, np_ - cout))).astype(jnp.bfloat16)
        bp = jnp.pad(b, (0, np_ - cout)).reshape(1, np_).astype(jnp.float32)
        return {"wp": wp, "bp": bp, "kh": kh, "kw": kw, "cout": cout,
                "stride": stride, "pad": pad, "act": act, "k_pad": kp - kdim}

    ks = jax.random.split(key, 9)
    backbone = [
        pack(rnd(ks[0], (3, 3, 3, 16)), jnp.zeros((16,)), 1, 1, "relu"),
        pack(rnd(ks[1], (3, 3, 16, 32)), jnp.zeros((32,)), 2, 1, "relu"),
        pack(rnd(ks[2], (3, 3, 32, 64)), jnp.zeros((64,)), 2, 1, "relu"),
    ]
    neck = [
        pack(rnd(ks[3], (1, 1, 32, 32)), jnp.zeros((32,)), 1, 0, "relu"),
        pack(rnd(ks[4], (1, 1, 64, 64)), jnp.zeros((64,)), 1, 0, "relu"),
    ]
    # Fused cls + reg head: concatenate weights along Cout -> one matmul/level.
    head, cins = [], (32, 64)
    for lvl, (a, cin) in enumerate(zip(ANCHORS_PER_LEVEL, cins)):
        wc = rnd(ks[5 + lvl], (3, 3, cin, a * num_classes))
        wr = rnd(ks[7 + lvl], (3, 3, cin, a * 4))
        head.append(pack(jnp.concatenate([wc, wr], axis=-1),
                         jnp.zeros((a * (num_classes + 4),)), 1, 1, None))
    # Priors are architecture-static: build, pad and transpose ONCE here.
    s0 = _out_size(image_size, 3, 2, 1)   # level-0 feature map size
    s1 = _out_size(s0, 3, 2, 1)           # level-1 feature map size
    priors = jnp.concatenate([
        make_priors(s0, s0, ANCHORS_PER_LEVEL[0], 0.1),
        make_priors(s1, s1, ANCHORS_PER_LEVEL[1], 0.3)], axis=0)
    a_tot = priors.shape[0]
    a_pad = _round_up(a_tot, 128)
    priors_t = jnp.pad(priors, ((0, a_pad - a_tot), (0, 0))).T  # (4, A_pad) f32
    return {"backbone": backbone, "neck": neck, "head": head,
            "priors_t": priors_t}


def ssd_detector_forward(params, images_nchw, training=False):
    """images_nchw: (N, 3, H, W) float32 (PyTorch convention). Eval mode."""
    # TODO(synk): training branch (target matching + multibox loss) not implemented.
    x = jnp.transpose(images_nchw, (0, 2, 3, 1)).astype(jnp.bfloat16)  # NHWC
    n = x.shape[0]

    # backbone
    x = conv2d(x, params["backbone"][0])
    f0 = conv2d(x, params["backbone"][1])
    f1 = conv2d(f0, params["backbone"][2])
    features = [f0, f1]

    # neck (per-level 1x1 conv + ReLU refinement)
    att_features = [conv2d(f, lyr) for f, lyr in zip(features, params["neck"])]

    # box head: one fused (cls | reg) conv per pyramid level
    cls_list, reg_list = [], []
    for f, lyr, a in zip(att_features, params["head"], ANCHORS_PER_LEVEL):
        out = conv2d(f, lyr)                       # (N, H, W, A*C + A*4) bf16
        h, w = f.shape[1], f.shape[2]
        cls_list.append(out[..., :a * NUM_CLASSES]
                        .reshape(n, h * w * a, NUM_CLASSES))
        reg_list.append(out[..., a * NUM_CLASSES:]
                        .reshape(n, h * w * a, 4))

    cls_logits = jnp.concatenate(cls_list, axis=1)   # (N, A_tot, C) bf16
    bbox_pred = jnp.concatenate(reg_list, axis=1)    # (N, A_tot, 4) bf16

    scores, boxes = postprocess(cls_logits, bbox_pred, params["priors_t"])

    # TODO(synk): per-image score thresholding + NMS post-processing omitted.
    return {"scores": scores, "boxes": boxes}


if __name__ == "__main__":
    key = jax.random.PRNGKey(0)
    pkey, ikey = jax.random.split(key)
    params = init_params(pkey)
    images = jax.random.normal(ikey, (2, 3, 32, 32), jnp.float32)

    dets = jax.block_until_ready(
        ssd_detector_forward(params, images, training=False))

    a_tot = 16 * 16 * ANCHORS_PER_LEVEL[0] + 8 * 8 * ANCHORS_PER_LEVEL[1]
    assert dets["scores"].shape == (2, a_tot, NUM_CLASSES)
    assert dets["boxes"].shape == (2, a_tot, 4)
    assert bool(jnp.all(jnp.isfinite(dets["scores"])))
    assert bool(jnp.all(jnp.isfinite(dets["boxes"])))
    # softmax rows must sum to 1 (normalization is exact f32 in-kernel)
    assert bool(jnp.allclose(jnp.sum(dets["scores"], axis=-1), 1.0, atol=1e-4))
    print("KERNEL_OK")
</pallas_src>

<mosaic_0001>
module attributes {stable_mosaic.version = 11 : i64} {
  func.func @_mm_bias_act_kernel(%arg0: i32, %arg1: memref<1024x128xbf16, #tpu.memory_space<vmem>>, %arg2: memref<128x128xbf16, #tpu.memory_space<vmem>>, %arg3: memref<1x128xf32, #tpu.memory_space<vmem>>, %arg4: memref<1024x128xbf16, #tpu.memory_space<vmem>>) attributes {dimension_semantics = [#tpu.dimension_semantics<parallel>], iteration_bounds = array<i64: 2>, scalar_prefetch = 0 : i64, scratch_operands = 0 : i64, tpu.core_type = #tpu.core_type<tc>, window_params = [{transform_indices = @transform_0, window_bounds = array<i64: 1024, 128>}, {pipeline_mode = #tpu.pipeline_mode<synchronous>, transform_indices = @transform_1, window_bounds = array<i64: 128, 128>}, {pipeline_mode = #tpu.pipeline_mode<synchronous>, transform_indices = @transform_2, window_bounds = array<i64: 1, 128>}, {transform_indices = @transform_3, window_bounds = array<i64: 1024, 128>}]} {
    %c0 = arith.constant 0 : index
    %c0_0 = arith.constant 0 : index
    %0 = vector.load %arg1[%c0, %c0_0] : memref<1024x128xbf16, #tpu.memory_space<vmem>>, vector<1024x128xbf16>
    %c0_1 = arith.constant 0 : index
    %c0_2 = arith.constant 0 : index
    %1 = vector.load %arg2[%c0_1, %c0_2] : memref<128x128xbf16, #tpu.memory_space<vmem>>, vector<128x128xbf16>
    %cst = arith.constant dense<0.000000e+00> : vector<1024x128xf32>
    %2 = tpu.matmul %0, %1, %cst {dimension_numbers = #tpu.dot_dimension_numbers<[1], [0], [0], [1], [0, 0, 1, 1], [], []>} : vector<1024x128xbf16>, vector<128x128xbf16>, vector<1024x128xf32> -> vector<1024x128xf32>
    %c0_3 = arith.constant 0 : index
    %c0_4 = arith.constant 0 : index
    %3 = vector.load %arg3[%c0_3, %c0_4] : memref<1x128xf32, #tpu.memory_space<vmem>>, vector<1x128xf32>
    %4 = vector.broadcast %3 : vector<1x128xf32> to vector<1024x128xf32>
    %5 = arith.addf %2, %4 : vector<1024x128xf32>
    %cst_5 = arith.constant 0.000000e+00 : f32
    %6 = vector.broadcast %cst_5 : f32 to vector<1024x128xf32>
    %7 = arith.maximumf %5, %6 : vector<1024x128xf32>
    %8 = arith.truncf %7 : vector<1024x128xf32> to vector<1024x128xbf16>
    %c0_6 = arith.constant 0 : index
    %c0_7 = arith.constant 0 : index
    %9 = vector.load %arg4[%c0_6, %c0_7] : memref<1024x128xbf16, #tpu.memory_space<vmem>>, vector<1024x128xbf16>
    tpu.vector_store %arg4[%c0_6, %c0_7], %8 {strides = array<i32>} : memref<1024x128xbf16, #tpu.memory_space<vmem>>, vector<1024x128xbf16>,
    return
  }
  func.func @transform_0(%arg0: i32) -> (i32, i32) {
    %c0_i32 = arith.constant 0 : i32
    %c0_i32_0 = arith.constant 0 : i32
    return %arg0, %c0_i32 : i32, i32
  }
  func.func @transform_1(%arg0: i32) -> (i32, i32) {
    %c0_i32 = arith.constant 0 : i32
    %c0_i32_0 = arith.constant 0 : i32
    %c0_i32_1 = arith.constant 0 : i32
    return %c0_i32, %c0_i32_0 : i32, i32
  }
  func.func @transform_2(%arg0: i32) -> (i32, i32) {
    %c0_i32 = arith.constant 0 : i32
    %c0_i32_0 = arith.constant 0 : i32
    %c0_i32_1 = arith.constant 0 : i32
    return %c0_i32, %c0_i32_0 : i32, i32
  }
  func.func @transform_3(%arg0: i32) -> (i32, i32) {
    %c0_i32 = arith.constant 0 : i32
    %c0_i32_0 = arith.constant 0 : i32
    return %arg0, %c0_i32 : i32, i32
  }
}

</mosaic_0001>

<bundles_post_ra>
// kernel: tpu_custom_call.1
= control target key start
LH: loop header
LB: loop body
LE: loop exit
PB: predicated region body
PF: predicated region fallthrough
CT: control target
= control target key end

     0   :  { %8 = vsyncpa [#allocation3], 0  ;;  %s3929_s0 = inlined_call_operand.hbm [shape: bf16[2048,128], index: 0, kind: input, shape index: {}]   ;;  %s3930_s1 = inlined_call_operand.hbm [shape: bf16[128,128], index: 1, kind: input, shape index: {}]   ;;  %s3931_s2 = inlined_call_operand.vmem [shape: f32[1,128], index: 2, kind: input, shape index: {}]   ;;  %s3932_s3 = inlined_call_operand.hbm [shape: bf16[2048,128], index: 3, kind: output, shape index: {}]  }
   0x1   :  { %10 = vsyncpa [#allocation3 + $0x1], 0 }
   0x2   :  { %11 = vsyncpa [#allocation6], 0 }
   0x3   :  { %12 = vsyncpa [#allocation4], 0 }
   0x4   :  { %14 = vsyncpa [#allocation4 + $0x1], 0  ;;  %s3452_s12 = smov 0   ;;  %s3454_s13 = smov 0  }
   0x5   :  { %s3456_s14 = smov 0   ;;  %s3458_s15 = smov 0  }
   0x6 LB: > { %s3473_s16 = sadd.s32 4294967295, %s3423_s15   ;;  %s2200_s17 = sadd.s32 4294967294, %s3423_s15   ;;  %s3423_s15 = sphi %s3458_s15, %s3952_s15   ;;  %s3419_s14 = sphi %s3456_s14, %s3951_s14   ;;  %s3415_s13 = sphi %s3454_s13, %s3950_s13   ;;  %s3411_s12 = sphi %s3452_s12, %s3949_s12  }
   0x7   : > { %p40_p0 = scmp.ne.s32.totalorder %s3415_s13, %s3411_s12  ;;  %p3933_p1 = scmp.eq.s32.totalorder %s3473_s16, 0 }
   0x8   : > { %p112_p3 = scmp.eq.s32.totalorder %s2200_s17, 1  ;;  %p2201_p5 = scmp.ge.s32.totalorder %s3423_s15, 1 }
   0x9   : > { %p3482_p4 = por %p3933_p1, %p40_p0  ;;  %p119_p7 = scmp.lt.s32.totalorder %s3423_s15, 3 }
   0xa   : > { %p3487_p6 = por %p112_p3, %p40_p0  ;;  %s3425_s21 = smov [#allocation5]  }
   0xb   : > { %s3936_s18 = scalar_select %p3482_p4, 1, 0 }
   0xc   : > { %s3937_s19 = scalar_select %p3487_p6, 1, 0 }
   0xd   : > { %p3492_p8 = pnand %p2201_p5, %p119_p7  ;;  %s131_s22 = sshll.u32 %s3425_s21, 4  ;;  %s3496_s22 = int_to_ptr.vmem [resolvable:$true] %s131_s22 }
   0xe   : > { %s3508_s24 = sadd.s32 1, %s3423_s15   ;;  %s27_s25 = sadd.s32 1, %s3419_s14 }
   0xf   : > { %s3938_s20 = scalar_select %p3492_p8, 1, 0 }
  0x10   : > { %p3170_p9 = pneg %p3492_p8  ;;  %s24_s26 = ssub.s32 %s3423_s15, %s3508_s24 }
  0x11   : > { %s3295_s29 = scalar_lea.hbm %s3930_s1, 1024 }
  0x12   : > { %p3503_p11 = pnand %p3170_p9, %p3933_p1  ;;  %p3296_p12 = scmp.ne.s32.totalorder %s3930_s1, %s3295_s29 }
  0x13   : > { %p3302_p5 = scmp.lt.u32.totalorder %s3295_s29, %s3930_s1 }
  0x14   : > { %p3297_p13 = pneg %p3503_p11 }
  0x16   : > { %p3298_p0 = pnand %p3297_p13, %p3296_p12 }
  0x18   : > { %p3299_p3 = pneg %p3298_p0 }
  0x1a   : > { %p3304_p7 = pnand %p3302_p5, %p3299_p3 }
  0x1c   : > { %3307 = shalt.err (!%p3304_p7)
}
  0x1d   : > { %s3308_s7 = scalar_lea.vmem %s3496_s22, 1024  ;;  %p3316_p2 = scmp.lt.s32.totalorder %s3496_s22, %s3496_s22 }
  0x1e   : > { %p3309_p9 = scmp.ne.s32.totalorder %s3496_s22, %s3308_s7  ;;  %p3317_p6 = scmp.lt.s32.totalorder %s3308_s7, %s3308_s7 }
  0x20   : > { %p3311_p10 = pnand %p3309_p9, %p3297_p13  ;;  %p3318_p4 = por %p3317_p6, %p3316_p2 }
  0x22   : > { %p3312_p1 = pneg %p3311_p10 }
  0x24   : > { %p3319_p8 = pnand %p3318_p4, %p3312_p1 }
  0x26   : > { %3322 = shalt.err (!%p3319_p8)
}
  0x27   : > { %s3426_s8 = smov 64   ;;  %s3427_s9 = smov 4  }
  0x28   : > { %3173 = dma.hbm_to_vmem [thread:$0]  (!%p3503_p11), %s3930_s1, 1024, %s3496_s22, [#allocation6], %s3426_s8, %s3426_s8, %s3427_s9  }
  0x29   : > { %p25_p1 = scmp.eq.s32.totalorder %s24_s26, 0  ;;  %p34_p2 = scmp.ne.s32.totalorder %s3419_s14, %s3415_s13 }
  0x2a   : > { %p35_p4 = scmp.eq.s32.totalorder %s3423_s15, 0  ;;  %p3183_p6 = scmp.lt.s32.totalorder %s3423_s15, 2 }
  0x2b   : > { %s3542_s17 = scalar_select %p25_p1, %s3419_s14, %s27_s25  }
  0x2c   : > { %p36_p8 = por %p35_p4, %p34_p2  ;;  %p3940_p10 = scmp.eq.s32.totalorder %s3473_s16, 1 }
  0x2d   : > { %s148_s23 = sand.u32 1, %s3419_s14   ;;  %s2417_s27 = sshll.u32 %s3423_s15, 13 }
  0x2e   : > { %p3546_p12 = por %p3940_p10, %p34_p2  ;;  %s2204_s28 = sshll.u32 %s148_s23, 9 }
  0x2f   : > { %s3555_s4 = scalar_lea.hbm %s3929_s0, %s2417_s27  ;;  %s152_s22 = scalar_lea.vmem [#allocation2], %s2204_s28 }
  0x30   : > { %s159_s25 = sshll.u32 %s152_s22, 4  ;;  %p3557_p11 = pnand %p3183_p6, %p36_p8  ;;  %s3561_s25 = int_to_ptr.vmem [resolvable:$true] %s159_s25 }
  0x31   : > { %s3563_s5 = scalar_lea.sflag [#allocation3], %s148_s23  ;;  %s3323_s6 = scalar_lea.hbm %s3555_s4, 8192 }
  0x32   : > { %p3324_p13 = scmp.ne.s32.totalorder %s3555_s4, %s3323_s6  ;;  %p3325_p0 = pneg %p3557_p11 }
  0x33   : > { %s3328_s11 = scalar_lea.hbm %s3929_s0, 16384  ;;  %p3329_p7 = scmp.lt.u32.totalorder %s3555_s4, %s3929_s0 }
  0x34   : > { %p3326_p3 = pnand %p3325_p0, %p3324_p13  ;;  %p3330_p9 = scmp.lt.u32.totalorder %s3328_s11, %s3323_s6 }
  0x35   : > { %p3332_p2 = scmp.lt.u32.totalorder %s3323_s6, %s3555_s4 }
  0x36   : > { %p3327_p5 = pneg %p3326_p3  ;;  %p3331_p1 = por %p3330_p9, %p3329_p7 }
  0x38   : > { %p3333_p4 = por %p3332_p2, %p3331_p1 }
  0x3a   : > { %p3334_p6 = pnand %p3333_p4, %p3327_p5 }
  0x3c   : > { %3337 = shalt.err (!%p3334_p6)
}
  0x3d   : > { %s3338_s23 = scalar_lea.vmem %s3561_s25, 8192  ;;  %s3428_s29 = smov [#allocation2]  }
  0x3e   : > { %p3339_p8 = scmp.ne.s32.totalorder %s3561_s25, %s3338_s23  ;;  %s3343_s30 = sshll.u32 %s3428_s29, 4  ;;  %s3344_s30 = int_to_ptr.vmem [resolvable:$false] %s3343_s30 }
  0x3f   : > { %s3345_s22 = scalar_lea.vmem %s3344_s30, 16384  ;;  %p3346_p3 = scmp.lt.s32.totalorder %s3561_s25, %s3344_s30 }
  0x40   : > { %p3341_p10 = pnand %p3339_p8, %p3325_p0  ;;  %p3347_p7 = scmp.lt.s32.totalorder %s3345_s22, %s3338_s23 }
  0x42   : > { %p3342_p13 = pneg %p3341_p10  ;;  %p3348_p9 = por %p3347_p7, %p3346_p3 }
  0x44   : > { %p3349_p1 = pnand %p3348_p9, %p3342_p13 }
  0x46   : > { %3352 = shalt.err (!%p3349_p1)
}
  0x47   : > { %3177 = dma.hbm_to_vmem [thread:$0]  (!%p3557_p11), %s3555_s4, 8192, %s3561_s25, %s3563_s5, %s3426_s8, %s3426_s8, %s3427_s9  }
  0x48   : > { %p3943_p0 = scmp.ne.s32.totalorder %s3938_s20, 0 }
  0x49   : > { %s3597_s6 = sand.u32 (!%p3943_p0), 1, %s3415_s13   ;;  %p3944_p5 = scmp.ne.s32.totalorder (!%p3943_p0), %s3936_s18, 0 }
  0x4a   : > { %171 = sbr.rel (%p3943_p0) target bundleno = 474 (0x1da), region = 32  ;;  %s2208_s7 = sshll.u32 (!%p3943_p0), %s3597_s6, 9 }
  0x4b   : > { %s174_s10 = scalar_lea.sflag (!%p3943_p0), [#allocation3], %s3597_s6  ;;  %s3603_s26 = scalar_lea.vmem (!%p3943_p0), [#allocation2], %s2208_s7 }
  0x51   : > { %3398 = dma.done.wait (%p3944_p5), %s174_s10, 8192  }
  0x52   : > { %3400 = vsyncadd (%p3944_p5), %s174_s10, 4294959104  ;;  %p3945_p11 = scmp.eq.s32.totalorder %s3473_s16, 0 }
  0x54   : > { %3402 = dma.done.wait (%p3945_p11), [#allocation6], 1024   ;;  %p3946_p2 = pmov %p3945_p11 }
  0x55   : > { %v3223_v0 = vld [vmem:[#allocation5] sm:$0xff]   ;;  %v3224_v1 = vld [vmem:[#allocation5 + $0x8] sm:$0xff]   ;;  %v3225_v2 = vld [vmem:[#allocation5 + $0x10] sm:$0xff]   ;;  %s3692_s8 = scalar_lea.vmem [#allocation7], %s2208_s7  ;;  %s2546_s9 = sshll.u32 %s3473_s16, 13 }
  0x56   : > { %3404 = vsyncadd (%p3946_p2), [#allocation6], 4294966272  ;;  %3002 = vmatprep.subr.bf16.mxu0 %v3223_v0  ;;  %3146 = vmatprep.subr.bf16.mxu1 %v3223_v0  ;;  %v3226_v3 = vld [vmem:[#allocation5 + $0x18] sm:$0xff]   ;;  %v3231_v4 = vld [vmem:[%s3603_s26] sm:$0xff]   ;;  %s2117_s4 = sshll.u32 %s3692_s8, 4  ;;  %s3879_s16 = scalar_lea.hbm %s3932_s3, %s2546_s9  ;;  %s3881_s4 = int_to_ptr.vmem [resolvable:$true] %s2117_s4 }
  0x57   : > { %3003 = vmatpush3.bf16.msra.mxu0 %v3223_v0  ;;  %3154 = vmatpush3.bf16.msra.mxu1 %v3223_v0  ;;  %v3232_v5 = vld [vmem:[%s3603_s26 + $0x100] sm:$0xff]   ;;  %v3228_v7 = vld [vmem:[#allocation5 + $0x28] sm:$0xff]   ;;  %v3229_v8 = vld [vmem:[#allocation5 + $0x30] sm:$0xff]   ;;  %s2104_s11 = scalar_lea.sflag [#allocation4], %s3597_s6  ;;  %s3353_s27 = scalar_lea.vmem %s3881_s4, 8192 }
  0x58   : > { %3004 = vmatprep.subr.bf16.mxu0 %v3224_v1  ;;  %3147 = vmatprep.subr.bf16.mxu1 %v3224_v1  ;;  %v3227_v6 = vld [vmem:[#allocation5 + $0x20] sm:$0xff]   ;;  %v3230_v9 = vld [vmem:[#allocation5 + $0x38] sm:$0xff]   ;;  %v3233_v10 = vld [vmem:[%s3603_s26 + $0x8] sm:$0xff]   ;;  %p3354_p4 = scmp.ne.s32.totalorder %s3881_s4, %s3353_s27  ;;  %s3429_s28 = smov [#allocation7]  }
  0x59   : > { %3018 = vmatprep.mubr.bf16.mxu0 %v3231_v4  ;;  %3082 = vmatprep.mubr.bf16.mxu1 %v3232_v5  ;;  %v3234_v11 = vld [vmem:[%s3603_s26 + $0x108] sm:$0xff]   ;;  %v3235_v12 = vld [vmem:[%s3603_s26 + $0x10] sm:$0xff]   ;;  %v3237_v14 = vld [vmem:[%s3603_s26 + $0x18] sm:$0xff]   ;;  %s3357_s23 = sshll.u32 %s3429_s28, 4  ;;  %s3358_s23 = int_to_ptr.vmem [resolvable:$false] %s3357_s23 }
  0x5a   : > { %v3236_v13 = vld [vmem:[%s3603_s26 + $0x110] sm:$0xff]   ;;  %v3238_v15 = vld [vmem:[%s3603_s26 + $0x118] sm:$0xff]   ;;  %v3239_v16 = vld [vmem:[%s3603_s26 + $0x20] sm:$0xff]   ;;  %p3355_p6 = pnand %p3354_p4, %p3546_p12  ;;  %s3359_s29 = scalar_lea.vmem %s3358_s23, 16384 }
  0x5b   : > { %3005 = vmatpush3.bf16.msra.mxu0 %v3224_v1  ;;  %3155 = vmatpush3.bf16.msra.mxu1 %v3224_v1  ;;  %v3240_v17 = vld [vmem:[%s3603_s26 + $0x120] sm:$0xff]   ;;  %v3241_v18 = vld [vmem:[%s3603_s26 + $0x28] sm:$0xff]   ;;  %v3243_v20 = vld [vmem:[%s3603_s26 + $0x30] sm:$0xff]   ;;  %p3360_p10 = scmp.lt.s32.totalorder %s3881_s4, %s3358_s23  ;;  %p3361_p13 = scmp.lt.s32.totalorder %s3359_s29, %s3353_s27 }
  0x5c   : > { %3006 = vmatprep.subr.bf16.mxu0 %v3225_v2  ;;  %3148 = vmatprep.subr.bf16.mxu1 %v3225_v2  ;;  %v3242_v19 = vld [vmem:[%s3603_s26 + $0x128] sm:$0xff]   ;;  %v3244_v21 = vld [vmem:[%s3603_s26 + $0x130] sm:$0xff]   ;;  %v3245_v22 = vld [vmem:[%s3603_s26 + $0x38] sm:$0xff]   ;;  %p3356_p8 = pneg %p3355_p6 }
  0x5d   : > { %v3246_v23 = vld [vmem:[%s3603_s26 + $0x138] sm:$0xff]   ;;  %v3247_v24 = vld [vmem:[%s3603_s26 + $0x40] sm:$0xff]   ;;  %v3249_v26 = vld [vmem:[%s3603_s26 + $0x48] sm:$0xff]   ;;  %p3362_p3 = por %p3361_p13, %p3360_p10 }
  0x5e   : > { %v3248_v25 = vld [vmem:[%s3603_s26 + $0x140] sm:$0xff]   ;;  %v3250_v27 = vld [vmem:[%s3603_s26 + $0x148] sm:$0xff]   ;;  %v3251_v28 = vld [vmem:[%s3603_s26 + $0x50] sm:$0xff]  }
  0x5f   : > { %3007 = vmatpush3.bf16.msra.mxu0 %v3225_v2  ;;  %3156 = vmatpush3.bf16.msra.mxu1 %v3225_v2  ;;  %v3252_v29 = vld [vmem:[%s3603_s26 + $0x150] sm:$0xff]   ;;  %v3253_v30 = vld [vmem:[%s3603_s26 + $0x58] sm:$0xff]   ;;  %v3255_v32 = vld [vmem:[%s3603_s26 + $0x60] sm:$0xff]   ;;  %p3363_p7 = pnand %p3362_p3, %p3356_p8 }
  0x60   : > { %3008 = vmatprep.subr.bf16.mxu0 %v3226_v3  ;;  %3149 = vmatprep.subr.bf16.mxu1 %v3226_v3  ;;  %v3254_v31 = vld [vmem:[%s3603_s26 + $0x158] sm:$0xff]   ;;  %v3256_v33 = vld [vmem:[%s3603_s26 + $0x160] sm:$0xff]   ;;  %v3257_v34 = vld [vmem:[%s3603_s26 + $0x68] sm:$0xff]  }
  0x61   : > { %v3258_v35 = vld [vmem:[%s3603_s26 + $0x168] sm:$0xff]   ;;  %v3259_v36 = vld [vmem:[%s3603_s26 + $0x70] sm:$0xff]   ;;  %v3261_v38 = vld [vmem:[%s3603_s26 + $0x78] sm:$0xff]  }
  0x62   : > { %v3260_v37 = vld [vmem:[%s3603_s26 + $0x170] sm:$0xff]   ;;  %v3262_v39 = vld [vmem:[%s3603_s26 + $0x178] sm:$0xff]   ;;  %v3263_v40 = vld [vmem:[%s3603_s26 + $0x80] sm:$0xff]  }
  0x63   : > { %3009 = vmatpush3.bf16.msra.mxu0 %v3226_v3  ;;  %3157 = vmatpush3.bf16.msra.mxu1 %v3226_v3  ;;  %v3264_v41 = vld [vmem:[%s3603_s26 + $0x180] sm:$0xff]   ;;  %v3265_v42 = vld [vmem:[%s3603_s26 + $0x88] sm:$0xff]   ;;  %v3267_v44 = vld [vmem:[%s3603_s26 + $0x90] sm:$0xff]  }
  0x64   : > { %3010 = vmatprep.subr.bf16.mxu0 %v3227_v6  ;;  %3150 = vmatprep.subr.bf16.mxu1 %v3227_v6  ;;  %v3266_v43 = vld [vmem:[%s3603_s26 + $0x188] sm:$0xff]   ;;  %v3268_v45 = vld [vmem:[%s3603_s26 + $0x190] sm:$0xff]   ;;  %v3269_v46 = vld [vmem:[%s3603_s26 + $0x98] sm:$0xff]  }
  0x65   : > { %v3270_v47 = vld [vmem:[%s3603_s26 + $0x198] sm:$0xff]   ;;  %v3271_v48 = vld [vmem:[%s3603_s26 + $0xa0] sm:$0xff]   ;;  %v3273_v50 = vld [vmem:[%s3603_s26 + $0xa8] sm:$0xff]  }
  0x66   : > { %v3272_v49 = vld [vmem:[%s3603_s26 + $0x1a0] sm:$0xff]   ;;  %v3274_v51 = vld [vmem:[%s3603_s26 + $0x1a8] sm:$0xff]   ;;  %v3275_v52 = vld [vmem:[%s3603_s26 + $0xb0] sm:$0xff]  }
  0x67   : > { %3011 = vmatpush3.bf16.msra.mxu0 %v3227_v6  ;;  %3158 = vmatpush3.bf16.msra.mxu1 %v3227_v6  ;;  %v3276_v53 = vld [vmem:[%s3603_s26 + $0x1b0] sm:$0xff]   ;;  %v3277_v54 = vld [vmem:[%s3603_s26 + $0xb8] sm:$0xff]   ;;  %v3279_v56 = vld [vmem:[%s3603_s26 + $0xc0] sm:$0xff]  }
  0x68   : > { %3012 = vmatprep.subr.bf16.mxu0 %v3228_v7  ;;  %3151 = vmatprep.subr.bf16.mxu1 %v3228_v7  ;;  %v3278_v55 = vld [vmem:[%s3603_s26 + $0x1b8] sm:$0xff]   ;;  %v3280_v57 = vld [vmem:[%s3603_s26 + $0x1c0] sm:$0xff]   ;;  %v3281_v58 = vld [vmem:[%s3603_s26 + $0xc8] sm:$0xff]  }
  0x69   : > { %v3282_v59 = vld [vmem:[%s3603_s26 + $0x1c8] sm:$0xff]   ;;  %v3283_v60 = vld [vmem:[%s3603_s26 + $0xd0] sm:$0xff]   ;;  %v3285_v62 = vld [vmem:[%s3603_s26 + $0xd8] sm:$0xff]  }
  0x6a   : > { %v3284_v61 = vld [vmem:[%s3603_s26 + $0x1d0] sm:$0xff]   ;;  %v3286_v63 = vld [vmem:[%s3603_s26 + $0x1d8] sm:$0xff]   ;;  %v3287_v0 = vld [vmem:[%s3603_s26 + $0xe0] sm:$0xff]  }
  0x6b   : > { %3013 = vmatpush3.bf16.msra.mxu0 %v3228_v7  ;;  %3159 = vmatpush3.bf16.msra.mxu1 %v3228_v7  ;;  %v3288_v1 = vld [vmem:[%s3603_s26 + $0x1e0] sm:$0xff]   ;;  %v3289_v2 = vld [vmem:[%s3603_s26 + $0xe8] sm:$0xff]   ;;  %v3291_v4 = vld [vmem:[%s3603_s26 + $0xf0] sm:$0xff]  }
  0x6c   : > { %3014 = vmatprep.subr.bf16.mxu0 %v3229_v8  ;;  %3152 = vmatprep.subr.bf16.mxu1 %v3229_v8  ;;  %v3290_v3 = vld [vmem:[%s3603_s26 + $0x1e8] sm:$0xff]   ;;  %v3292_v5 = vld [vmem:[%s3603_s26 + $0x1f0] sm:$0xff]   ;;  %v3293_v6 = vld [vmem:[%s3603_s26 + $0xf8] sm:$0xff]  }
  0x6d   : > { %v3294_v7 = vld [vmem:[%s3603_s26 + $0x1f8] sm:$0xff]  }
  0x6f   : > { %3015 = vmatpush3.bf16.msra.mxu0 %v3229_v8  ;;  %3160 = vmatpush3.bf16.msra.mxu1 %v3229_v8  ;;  %v3680_v8 = vld [vmem:[%s3931_s2] ss:$0 sm:$0xff] }
  0x70   : > { %3016 = vmatprep.subr.bf16.mxu0 %v3230_v9  ;;  %3153 = vmatprep.subr.bf16.mxu1 %v3230_v9 }
  0x73   : > { %3017 = vmatpush3.bf16.msra.mxu0 %v3230_v9  ;;  %3161 = vmatpush3.bf16.msra.mxu1 %v3230_v9 }
  0x76   : > { %3019 = vmatmul.mubr.bf16.vlgmr.msra.gmra.mrb[0].mxu0 %v3233_v10  ;;  %3083 = vmatmul.mubr.bf16.vlgmr.msra.gmra.mrb[0].mxu1 %v3234_v11 }
  0x77   : > { %3022 = vmatprep.mubr.bf16.mxu0 %v3235_v12  ;;  %3086 = vmatprep.mubr.bf16.mxu1 %v3236_v13 }
  0x7e   : > { %3023 = vmatmul.mubr.bf16.gmra.mrb[4].mxu0 %v3237_v14  ;;  %3087 = vmatmul.mubr.bf16.gmra.mrb[4].mxu1 %v3238_v15 }
  0x7f   : > { %3026 = vmatprep.mubr.bf16.mxu0 %v3239_v16  ;;  %3090 = vmatprep.mubr.bf16.mxu1 %v3240_v17 }
  0x86   : > { %3027 = vmatmul.mubr.bf16.gmra.mrb[8].mxu0 %v3241_v18  ;;  %3091 = vmatmul.mubr.bf16.gmra.mrb[8].mxu1 %v3242_v19 }
  0x87   : > { %3030 = vmatprep.mubr.bf16.mxu0 %v3243_v20  ;;  %3094 = vmatprep.mubr.bf16.mxu1 %v3244_v21 }
  0x8e   : > { %3031 = vmatmul.mubr.bf16.gmra.mrb[12].mxu0 %v3245_v22  ;;  %3095 = vmatmul.mubr.bf16.gmra.mrb[12].mxu1 %v3246_v23 }
  0x8f   : > { %3034 = vmatprep.mubr.bf16.mxu0 %v3247_v24  ;;  %3098 = vmatprep.mubr.bf16.mxu1 %v3248_v25 }
  0x96   : > { %3035 = vmatmul.mubr.bf16.gmra.mrb[16].mxu0 %v3249_v26  ;;  %3099 = vmatmul.mubr.bf16.gmra.mrb[16].mxu1 %v3250_v27 }
  0x97   : > { %3038 = vmatprep.mubr.bf16.mxu0 %v3251_v28  ;;  %3102 = vmatprep.mubr.bf16.mxu1 %v3252_v29 }
  0x9e   : > { %3039 = vmatmul.mubr.bf16.gmra.mrb[20].mxu0 %v3253_v30  ;;  %3103 = vmatmul.mubr.bf16.gmra.mrb[20].mxu1 %v3254_v31 }
  0x9f   : > { %3042 = vmatprep.mubr.bf16.mxu0 %v3255_v32  ;;  %3106 = vmatprep.mubr.bf16.mxu1 %v3256_v33 }
  0xa6   : > { %3043 = vmatmul.mubr.bf16.gmra.mrb[24].mxu0 %v3257_v34  ;;  %3107 = vmatmul.mubr.bf16.gmra.mrb[24].mxu1 %v3258_v35 }
  0xa7   : > { %3046 = vmatprep.mubr.bf16.mxu0 %v3259_v36  ;;  %3110 = vmatprep.mubr.bf16.mxu1 %v3260_v37 }
  0xae   : > { %3047 = vmatmul.mubr.bf16.gmra.mrb[28].mxu0 %v3261_v38  ;;  %3111 = vmatmul.mubr.bf16.gmra.mrb[28].mxu1 %v3262_v39 }
  0xaf   : > { %3050 = vmatprep.mubr.bf16.mxu0 %v3263_v40  ;;  %3114 = vmatprep.mubr.bf16.mxu1 %v3264_v41 }
  0xb6   : > { %3051 = vmatmul.mubr.bf16.gmra.mrb[32].mxu0 %v3265_v42  ;;  %3115 = vmatmul.mubr.bf16.gmra.mrb[32].mxu1 %v3266_v43 }
  0xb7   : > { %3054 = vmatprep.mubr.bf16.mxu0 %v3267_v44  ;;  %3118 = vmatprep.mubr.bf16.mxu1 %v3268_v45 }
  0xbe   : > { %3055 = vmatmul.mubr.bf16.gmra.mrb[36].mxu0 %v3269_v46  ;;  %3119 = vmatmul.mubr.bf16.gmra.mrb[36].mxu1 %v3270_v47 }
  0xbf   : > { %3058 = vmatprep.mubr.bf16.mxu0 %v3271_v48  ;;  %3122 = vmatprep.mubr.bf16.mxu1 %v3272_v49 }
  0xc6   : > { %3059 = vmatmul.mubr.bf16.gmra.mrb[40].mxu0 %v3273_v50  ;;  %3123 = vmatmul.mubr.bf16.gmra.mrb[40].mxu1 %v3274_v51 }
  0xc7   : > { %3062 = vmatprep.mubr.bf16.mxu0 %v3275_v52  ;;  %3126 = vmatprep.mubr.bf16.mxu1 %v3276_v53 }
  0xce   : > { %3063 = vmatmul.mubr.bf16.gmra.mrb[44].mxu0 %v3277_v54  ;;  %3127 = vmatmul.mubr.bf16.gmra.mrb[44].mxu1 %v3278_v55 }
  0xcf   : > { %3066 = vmatprep.mubr.bf16.mxu0 %v3279_v56  ;;  %3130 = vmatprep.mubr.bf16.mxu1 %v3280_v57 }
  0xd6   : > { %3067 = vmatmul.mubr.bf16.gmra.mrb[48].mxu0 %v3281_v58  ;;  %3131 = vmatmul.mubr.bf16.gmra.mrb[48].mxu1 %v3282_v59 }
  0xd7   : > { %3070 = vmatprep.mubr.bf16.mxu0 %v3283_v60  ;;  %3134 = vmatprep.mubr.bf16.mxu1 %v3284_v61 }
  0xde   : > { %3071 = vmatmul.mubr.bf16.gmra.mrb[52].mxu0 %v3285_v62  ;;  %3135 = vmatmul.mubr.bf16.gmra.mrb[52].mxu1 %v3286_v63 }
  0xdf   : > { %3074 = vmatprep.mubr.bf16.mxu0 %v3287_v0  ;;  %3138 = vmatprep.mubr.bf16.mxu1 %v3288_v1 }
  0xe6   : > { %3075 = vmatmul.mubr.bf16.gmra.mrb[56].mxu0 %v3289_v2  ;;  %3139 = vmatmul.mubr.bf16.gmra.mrb[56].mxu1 %v3290_v3 }
  0xe7   : > { %3078 = vmatprep.mubr.bf16.mxu0 %v3291_v4  ;;  %3142 = vmatprep.mubr.bf16.mxu1 %v3292_v5 }
  0xee   : > { %3079 = vmatmul.mubr.bf16.gmra.mrb[60].mxu0 %v3293_v6  ;;  %3143 = vmatmul.mubr.bf16.gmra.mrb[60].mxu1 %v3294_v7 }
 0x149   : > { %v3020_v9 = vpop.f32.mrb[0].mxu0  ;;  %v3084_v10 = vpop.f32.mrb[0].mxu1 }
 0x14a   : > { %v833_v11 = vadd.f32 %v3020_v9, %v3680_v8  ;;  %v1089_v12 = vadd.f32 %v3084_v10, %v3680_v8  ;;  %v824_v13 = vpop.f32.mrb[1].mxu0  ;;  %v1080_v14 = vpop.f32.mrb[1].mxu1 }
 0x14b   : > { %v825_v15 = vadd.f32 %v3680_v8, %v824_v13  ;;  %v1081_v16 = vadd.f32 %v3680_v8, %v1080_v14  ;;  %v3021_v17 = vpop.f32.mrb[2].mxu0  ;;  %v3085_v18 = vpop.f32.mrb[2].mxu1 }
 0x14c   : > { %v836_v19 = vadd.f32 %v3021_v17, %v3680_v8  ;;  %v1092_v20 = vadd.f32 %v3085_v18, %v3680_v8  ;;  %v827_v21 = vpop.f32.mrb[3].mxu0  ;;  %v1083_v22 = vpop.f32.mrb[3].mxu1  ;;  %v1337_v25 = vmax.f32 %v833_v11, 0.0  ;;  %v1401_v26 = vmax.f32 %v1089_v12, 0.0 }
 0x14d   : > { %v828_v23 = vadd.f32 %v3680_v8, %v827_v21  ;;  %v1084_v24 = vadd.f32 %v3680_v8, %v1083_v22  ;;  %v1335_v29 = vmax.f32 %v825_v15, 0.0  ;;  %v1399_v30 = vmax.f32 %v1081_v16, 0.0 }
 0x14e   : > { %v1338_v27 = vmax.f32 %v836_v19, 0.0  ;;  %v1402_v28 = vmax.f32 %v1092_v20, 0.0 }
 0x14f   : > { %v1336_v31 = vmax.f32 %v828_v23, 0.0  ;;  %v1400_v32 = vmax.f32 %v1084_v24, 0.0 }
 0x150   : > { %v2555_v33 = vpack.c.bf16 %v1338_v27, %v1337_v25  ;;  %v2715_v34 = vpack.c.bf16 %v1402_v28, %v1401_v26 }
 0x151   : > { %v2550_v35 = vpack.c.bf16 %v1336_v31, %v1335_v29  ;;  %v2710_v36 = vpack.c.bf16 %v1400_v32, %v1399_v30  ;;  %v3024_v37 = vpop.f32.mrb[4].mxu0  ;;  %v3088_v38 = vpop.f32.mrb[4].mxu1 }
 0x152   : > { %2867 = vst [vmem:[%s3692_s8 + $0x8] sm:$0xff] %v2555_v33   ;;  %2899 = vst [vmem:[%s3692_s8 + $0x108] sm:$0xff] %v2715_v34   ;;  %v849_v39 = vadd.f32 %v3024_v37, %v3680_v8  ;;  %v1105_v40 = vadd.f32 %v3088_v38, %v3680_v8  ;;  %v840_v41 = vpop.f32.mrb[5].mxu0  ;;  %v1096_v42 = vpop.f32.mrb[5].mxu1 }
 0x153   : > { %2551 = vst [vmem:[%s3692_s8] sm:$0xff] %v2550_v35   ;;  %2898 = vst [vmem:[%s3692_s8 + $0x100] sm:$0xff] %v2710_v36   ;;  %v841_v43 = vadd.f32 %v3680_v8, %v840_v41  ;;  %v1097_v44 = vadd.f32 %v3680_v8, %v1096_v42  ;;  %v3025_v45 = vpop.f32.mrb[6].mxu0  ;;  %v3089_v46 = vpop.f32.mrb[6].mxu1 }
 0x154   : > { %v852_v47 = vadd.f32 %v3025_v45, %v3680_v8  ;;  %v1108_v48 = vadd.f32 %v3089_v46, %v3680_v8  ;;  %v843_v49 = vpop.f32.mrb[7].mxu0  ;;  %v1099_v50 = vpop.f32.mrb[7].mxu1  ;;  %v1341_v53 = vmax.f32 %v849_v39, 0.0  ;;  %v1405_v54 = vmax.f32 %v1105_v40, 0.0 }
 0x155   : > { %v844_v51 = vadd.f32 %v3680_v8, %v843_v49  ;;  %v1100_v52 = vadd.f32 %v3680_v8, %v1099_v50  ;;  %v1339_v57 = vmax.f32 %v841_v43, 0.0  ;;  %v1403_v58 = vmax.f32 %v1097_v44, 0.0 }
 0x156   : > { %v1342_v55 = vmax.f32 %v852_v47, 0.0  ;;  %v1406_v56 = vmax.f32 %v1108_v48, 0.0 }
 0x157   : > { %v1340_v59 = vmax.f32 %v844_v51, 0.0  ;;  %v1404_v60 = vmax.f32 %v1100_v52, 0.0 }
 0x158   : > { %v2565_v61 = vpack.c.bf16 %v1342_v55, %v1341_v53  ;;  %v2725_v62 = vpack.c.bf16 %v1406_v56, %v1405_v54 }
 0x159   : > { %v2560_v63 = vpack.c.bf16 %v1340_v59, %v1339_v57  ;;  %v2720_v0 = vpack.c.bf16 %v1404_v60, %v1403_v58  ;;  %v3028_v1 = vpop.f32.mrb[8].mxu0  ;;  %v3092_v2 = vpop.f32.mrb[8].mxu1 }
 0x15a   : > { %2869 = vst [vmem:[%s3692_s8 + $0x18] sm:$0xff] %v2565_v61   ;;  %2901 = vst [vmem:[%s3692_s8 + $0x118] sm:$0xff] %v2725_v62   ;;  %v865_v3 = vadd.f32 %v3028_v1, %v3680_v8  ;;  %v1121_v4 = vadd.f32 %v3092_v2, %v3680_v8  ;;  %v856_v5 = vpop.f32.mrb[9].mxu0  ;;  %v1112_v6 = vpop.f32.mrb[9].mxu1 }
 0x15b   : > { %2868 = vst [vmem:[%s3692_s8 + $0x10] sm:$0xff] %v2560_v63   ;;  %2900 = vst [vmem:[%s3692_s8 + $0x110] sm:$0xff] %v2720_v0   ;;  %v857_v7 = vadd.f32 %v3680_v8, %v856_v5  ;;  %v1113_v9 = vadd.f32 %v3680_v8, %v1112_v6  ;;  %v3029_v10 = vpop.f32.mrb[10].mxu0  ;;  %v3093_v11 = vpop.f32.mrb[10].mxu1 }
 0x15c   : > { %v868_v12 = vadd.f32 %v3029_v10, %v3680_v8  ;;  %v1124_v13 = vadd.f32 %v3093_v11, %v3680_v8  ;;  %v859_v14 = vpop.f32.mrb[11].mxu0  ;;  %v1115_v15 = vpop.f32.mrb[11].mxu1  ;;  %v1345_v18 = vmax.f32 %v865_v3, 0.0  ;;  %v1409_v19 = vmax.f32 %v1121_v4, 0.0 }
 0x15d   : > { %v860_v16 = vadd.f32 %v3680_v8, %v859_v14  ;;  %v1116_v17 = vadd.f32 %v3680_v8, %v1115_v15  ;;  %v1343_v22 = vmax.f32 %v857_v7, 0.0  ;;  %v1407_v23 = vmax.f32 %v1113_v9, 0.0 }
 0x15e   : > { %v1346_v20 = vmax.f32 %v868_v12, 0.0  ;;  %v1410_v21 = vmax.f32 %v1124_v13, 0.0 }
 0x15f   : > { %v1344_v24 = vmax.f32 %v860_v16, 0.0  ;;  %v1408_v25 = vmax.f32 %v1116_v17, 0.0 }
 0x160   : > { %v2575_v26 = vpack.c.bf16 %v1346_v20, %v1345_v18  ;;  %v2735_v27 = vpack.c.bf16 %v1410_v21, %v1409_v19 }
 0x161   : > { %v2570_v28 = vpack.c.bf16 %v1344_v24, %v1343_v22  ;;  %v2730_v29 = vpack.c.bf16 %v1408_v25, %v1407_v23  ;;  %v3032_v30 = vpop.f32.mrb[12].mxu0  ;;  %v3096_v31 = vpop.f32.mrb[12].mxu1 }
 0x162   : > { %2871 = vst [vmem:[%s3692_s8 + $0x28] sm:$0xff] %v2575_v26   ;;  %2903 = vst [vmem:[%s3692_s8 + $0x128] sm:$0xff] %v2735_v27   ;;  %v881_v32 = vadd.f32 %v3032_v30, %v3680_v8  ;;  %v1137_v33 = vadd.f32 %v3096_v31, %v3680_v8  ;;  %v872_v34 = vpop.f32.mrb[13].mxu0  ;;  %v1128_v35 = vpop.f32.mrb[13].mxu1 }
 0x163   : > { %2870 = vst [vmem:[%s3692_s8 + $0x20] sm:$0xff] %v2570_v28   ;;  %2902 = vst [vmem:[%s3692_s8 + $0x120] sm:$0xff] %v2730_v29   ;;  %v873_v36 = vadd.f32 %v3680_v8, %v872_v34  ;;  %v1129_v37 = vadd.f32 %v3680_v8, %v1128_v35  ;;  %v3033_v38 = vpop.f32.mrb[14].mxu0  ;;  %v3097_v39 = vpop.f32.mrb[14].mxu1 }
 0x164   : > { %v884_v40 = vadd.f32 %v3033_v38, %v3680_v8  ;;  %v1140_v41 = vadd.f32 %v3097_v39, %v3680_v8  ;;  %v875_v42 = vpop.f32.mrb[15].mxu0  ;;  %v1131_v43 = vpop.f32.mrb[15].mxu1  ;;  %v1349_v46 = vmax.f32 %v881_v32, 0.0  ;;  %v1413_v47 = vmax.f32 %v1137_v33, 0.0 }
 0x165   : > { %v876_v44 = vadd.f32 %v3680_v8, %v875_v42  ;;  %v1132_v45 = vadd.f32 %v3680_v8, %v1131_v43  ;;  %v1347_v50 = vmax.f32 %v873_v36, 0.0  ;;  %v1411_v51 = vmax.f32 %v1129_v37, 0.0 }
 0x166   : > { %v1350_v48 = vmax.f32 %v884_v40, 0.0  ;;  %v1414_v49 = vmax.f32 %v1140_v41, 0.0 }
 0x167   : > { %v1348_v52 = vmax.f32 %v876_v44, 0.0  ;;  %v1412_v53 = vmax.f32 %v1132_v45, 0.0 }
 0x168   : > { %v2585_v54 = vpack.c.bf16 %v1350_v48, %v1349_v46  ;;  %v2745_v55 = vpack.c.bf16 %v1414_v49, %v1413_v47 }
 0x169   : > { %v2580_v56 = vpack.c.bf16 %v1348_v52, %v1347_v50  ;;  %v2740_v57 = vpack.c.bf16 %v1412_v53, %v1411_v51  ;;  %v3036_v58 = vpop.f32.mrb[16].mxu0  ;;  %v3100_v59 = vpop.f32.mrb[16].mxu1 }
 0x16a   : > { %2873 = vst [vmem:[%s3692_s8 + $0x38] sm:$0xff] %v2585_v54   ;;  %2905 = vst [vmem:[%s3692_s8 + $0x138] sm:$0xff] %v2745_v55   ;;  %v897_v60 = vadd.f32 %v3036_v58, %v3680_v8  ;;  %v1153_v61 = vadd.f32 %v3100_v59, %v3680_v8  ;;  %v888_v62 = vpop.f32.mrb[17].mxu0  ;;  %v1144_v63 = vpop.f32.mrb[17].mxu1 }
 0x16b   : > { %2872 = vst [vmem:[%s3692_s8 + $0x30] sm:$0xff] %v2580_v56   ;;  %2904 = vst [vmem:[%s3692_s8 + $0x130] sm:$0xff] %v2740_v57   ;;  %v889_v0 = vadd.f32 %v3680_v8, %v888_v62  ;;  %v1145_v1 = vadd.f32 %v3680_v8, %v1144_v63  ;;  %v3037_v2 = vpop.f32.mrb[18].mxu0  ;;  %v3101_v3 = vpop.f32.mrb[18].mxu1 }
 0x16c   : > { %v900_v4 = vadd.f32 %v3037_v2, %v3680_v8  ;;  %v1156_v5 = vadd.f32 %v3101_v3, %v3680_v8  ;;  %v891_v6 = vpop.f32.mrb[19].mxu0  ;;  %v1147_v7 = vpop.f32.mrb[19].mxu1  ;;  %v1353_v11 = vmax.f32 %v897_v60, 0.0  ;;  %v1417_v12 = vmax.f32 %v1153_v61, 0.0 }
 0x16d   : > { %v892_v9 = vadd.f32 %v3680_v8, %v891_v6  ;;  %v1148_v10 = vadd.f32 %v3680_v8, %v1147_v7  ;;  %v1351_v15 = vmax.f32 %v889_v0, 0.0  ;;  %v1415_v16 = vmax.f32 %v1145_v1, 0.0 }
 0x16e   : > { %v1354_v13 = vmax.f32 %v900_v4, 0.0  ;;  %v1418_v14 = vmax.f32 %v1156_v5, 0.0 }
 0x16f   : > { %v1352_v17 = vmax.f32 %v892_v9, 0.0  ;;  %v1416_v18 = vmax.f32 %v1148_v10, 0.0 }
 0x170   : > { %v2595_v19 = vpack.c.bf16 %v1354_v13, %v1353_v11  ;;  %v2755_v20 = vpack.c.bf16 %v1418_v14, %v1417_v12 }
 0x171   : > { %v2590_v21 = vpack.c.bf16 %v1352_v17, %v1351_v15  ;;  %v2750_v22 = vpack.c.bf16 %v1416_v18, %v1415_v16  ;;  %v3040_v23 = vpop.f32.mrb[20].mxu0  ;;  %v3104_v24 = vpop.f32.mrb[20].mxu1 }
 0x172   : > { %2875 = vst [vmem:[%s3692_s8 + $0x48] sm:$0xff] %v2595_v19   ;;  %2907 = vst [vmem:[%s3692_s8 + $0x148] sm:$0xff] %v2755_v20   ;;  %v913_v25 = vadd.f32 %v3040_v23, %v3680_v8  ;;  %v1169_v26 = vadd.f32 %v3104_v24, %v3680_v8  ;;  %v904_v27 = vpop.f32.mrb[21].mxu0  ;;  %v1160_v28 = vpop.f32.mrb[21].mxu1 }
 0x173   : > { %2874 = vst [vmem:[%s3692_s8 + $0x40] sm:$0xff] %v2590_v21   ;;  %2906 = vst [vmem:[%s3692_s8 + $0x140] sm:$0xff] %v2750_v22   ;;  %v905_v29 = vadd.f32 %v3680_v8, %v904_v27  ;;  %v1161_v30 = vadd.f32 %v3680_v8, %v1160_v28  ;;  %v3041_v31 = vpop.f32.mrb[22].mxu0  ;;  %v3105_v32 = vpop.f32.mrb[22].mxu1 }
 0x174   : > { %v916_v33 = vadd.f32 %v3041_v31, %v3680_v8  ;;  %v1172_v34 = vadd.f32 %v3105_v32, %v3680_v8  ;;  %v907_v35 = vpop.f32.mrb[23].mxu0  ;;  %v1163_v36 = vpop.f32.mrb[23].mxu1  ;;  %v1357_v39 = vmax.f32 %v913_v25, 0.0  ;;  %v1421_v40 = vmax.f32 %v1169_v26, 0.0 }
 0x175   : > { %v908_v37 = vadd.f32 %v3680_v8, %v907_v35  ;;  %v1164_v38 = vadd.f32 %v3680_v8, %v1163_v36  ;;  %v1355_v43 = vmax.f32 %v905_v29, 0.0  ;;  %v1419_v44 = vmax.f32 %v1161_v30, 0.0 }
 0x176   : > { %v1358_v41 = vmax.f32 %v916_v33, 0.0  ;;  %v1422_v42 = vmax.f32 %v1172_v34, 0.0 }
 0x177   : > { %v1356_v45 = vmax.f32 %v908_v37, 0.0  ;;  %v1420_v46 = vmax.f32 %v1164_v38, 0.0 }
 0x178   : > { %v2605_v47 = vpack.c.bf16 %v1358_v41, %v1357_v39  ;;  %v2765_v48 = vpack.c.bf16 %v1422_v42, %v1421_v40 }
 0x179   : > { %v2600_v49 = vpack.c.bf16 %v1356_v45, %v1355_v43  ;;  %v2760_v50 = vpack.c.bf16 %v1420_v46, %v1419_v44  ;;  %v3044_v51 = vpop.f32.mrb[24].mxu0  ;;  %v3108_v52 = vpop.f32.mrb[24].mxu1 }
 0x17a   : > { %2877 = vst [vmem:[%s3692_s8 + $0x58] sm:$0xff] %v2605_v47   ;;  %2909 = vst [vmem:[%s3692_s8 + $0x158] sm:$0xff] %v2765_v48   ;;  %v929_v53 = vadd.f32 %v3044_v51, %v3680_v8  ;;  %v1185_v54 = vadd.f32 %v3108_v52, %v3680_v8  ;;  %v920_v55 = vpop.f32.mrb[25].mxu0  ;;  %v1176_v56 = vpop.f32.mrb[25].mxu1 }
 0x17b   : > { %2876 = vst [vmem:[%s3692_s8 + $0x50] sm:$0xff] %v2600_v49   ;;  %2908 = vst [vmem:[%s3692_s8 + $0x150] sm:$0xff] %v2760_v50   ;;  %v921_v57 = vadd.f32 %v3680_v8, %v920_v55  ;;  %v1177_v58 = vadd.f32 %v3680_v8, %v1176_v56  ;;  %v3045_v59 = vpop.f32.mrb[26].mxu0  ;;  %v3109_v60 = vpop.f32.mrb[26].mxu1 }
 0x17c   : > { %v932_v61 = vadd.f32 %v3045_v59, %v3680_v8  ;;  %v1188_v62 = vadd.f32 %v3109_v60, %v3680_v8  ;;  %v923_v63 = vpop.f32.mrb[27].mxu0  ;;  %v1179_v0 = vpop.f32.mrb[27].mxu1  ;;  %v1361_v3 = vmax.f32 %v929_v53, 0.0  ;;  %v1425_v4 = vmax.f32 %v1185_v54, 0.0 }
 0x17d   : > { %v924_v1 = vadd.f32 %v3680_v8, %v923_v63  ;;  %v1180_v2 = vadd.f32 %v3680_v8, %v1179_v0  ;;  %v1359_v7 = vmax.f32 %v921_v57, 0.0  ;;  %v1423_v9 = vmax.f32 %v1177_v58, 0.0 }
 0x17e   : > { %v1362_v5 = vmax.f32 %v932_v61, 0.0  ;;  %v1426_v6 = vmax.f32 %v1188_v62, 0.0 }
 0x17f   : > { %v1360_v10 = vmax.f32 %v924_v1, 0.0  ;;  %v1424_v11 = vmax.f32 %v1180_v2, 0.0 }
 0x180   : > { %v2615_v12 = vpack.c.bf16 %v1362_v5, %v1361_v3  ;;  %v2775_v13 = vpack.c.bf16 %v1426_v6, %v1425_v4 }
 0x181   : > { %v2610_v14 = vpack.c.bf16 %v1360_v10, %v1359_v7  ;;  %v2770_v15 = vpack.c.bf16 %v1424_v11, %v1423_v9  ;;  %v3048_v16 = vpop.f32.mrb[28].mxu0  ;;  %v3112_v17 = vpop.f32.mrb[28].mxu1 }
 0x182   : > { %2879 = vst [vmem:[%s3692_s8 + $0x68] sm:$0xff] %v2615_v12   ;;  %2911 = vst [vmem:[%s3692_s8 + $0x168] sm:$0xff] %v2775_v13   ;;  %v945_v18 = vadd.f32 %v3048_v16, %v3680_v8  ;;  %v1201_v19 = vadd.f32 %v3112_v17, %v3680_v8  ;;  %v936_v20 = vpop.f32.mrb[29].mxu0  ;;  %v1192_v21 = vpop.f32.mrb[29].mxu1 }
 0x183   : > { %2878 = vst [vmem:[%s3692_s8 + $0x60] sm:$0xff] %v2610_v14   ;;  %2910 = vst [vmem:[%s3692_s8 + $0x160] sm:$0xff] %v2770_v15   ;;  %v937_v22 = vadd.f32 %v3680_v8, %v936_v20  ;;  %v1193_v23 = vadd.f32 %v3680_v8, %v1192_v21  ;;  %v3049_v24 = vpop.f32.mrb[30].mxu0  ;;  %v3113_v25 = vpop.f32.mrb[30].mxu1 }
 0x184   : > { %v948_v26 = vadd.f32 %v3049_v24, %v3680_v8  ;;  %v1204_v27 = vadd.f32 %v3113_v25, %v3680_v8  ;;  %v939_v28 = vpop.f32.mrb[31].mxu0  ;;  %v1195_v29 = vpop.f32.mrb[31].mxu1  ;;  %v1365_v32 = vmax.f32 %v945_v18, 0.0  ;;  %v1429_v33 = vmax.f32 %v1201_v19, 0.0 }
 0x185   : > { %v940_v30 = vadd.f32 %v3680_v8, %v939_v28  ;;  %v1196_v31 = vadd.f32 %v3680_v8, %v1195_v29  ;;  %v1363_v36 = vmax.f32 %v937_v22, 0.0  ;;  %v1427_v37 = vmax.f32 %v1193_v23, 0.0 }
 0x186   : > { %v1366_v34 = vmax.f32 %v948_v26, 0.0  ;;  %v1430_v35 = vmax.f32 %v1204_v27, 0.0 }
 0x187   : > { %v1364_v38 = vmax.f32 %v940_v30, 0.0  ;;  %v1428_v39 = vmax.f32 %v1196_v31, 0.0 }
 0x188   : > { %v2625_v40 = vpack.c.bf16 %v1366_v34, %v1365_v32  ;;  %v2785_v41 = vpack.c.bf16 %v1430_v35, %v1429_v33 }
 0x189   : > { %v2620_v42 = vpack.c.bf16 %v1364_v38, %v1363_v36  ;;  %v2780_v43 = vpack.c.bf16 %v1428_v39, %v1427_v37  ;;  %v3052_v44 = vpop.f32.mrb[32].mxu0  ;;  %v3116_v45 = vpop.f32.mrb[32].mxu1 }
 0x18a   : > { %2881 = vst [vmem:[%s3692_s8 + $0x78] sm:$0xff] %v2625_v40   ;;  %2913 = vst [vmem:[%s3692_s8 + $0x178] sm:$0xff] %v2785_v41   ;;  %v961_v46 = vadd.f32 %v3052_v44, %v3680_v8  ;;  %v1217_v47 = vadd.f32 %v3116_v45, %v3680_v8  ;;  %v952_v48 = vpop.f32.mrb[33].mxu0  ;;  %v1208_v49 = vpop.f32.mrb[33].mxu1 }
 0x18b   : > { %2880 = vst [vmem:[%s3692_s8 + $0x70] sm:$0xff] %v2620_v42   ;;  %2912 = vst [vmem:[%s3692_s8 + $0x170] sm:$0xff] %v2780_v43   ;;  %v953_v50 = vadd.f32 %v3680_v8, %v952_v48  ;;  %v1209_v51 = vadd.f32 %v3680_v8, %v1208_v49  ;;  %v3053_v52 = vpop.f32.mrb[34].mxu0  ;;  %v3117_v53 = vpop.f32.mrb[34].mxu1 }
 0x18c   : > { %v964_v54 = vadd.f32 %v3053_v52, %v3680_v8  ;;  %v1220_v55 = vadd.f32 %v3117_v53, %v3680_v8  ;;  %v955_v56 = vpop.f32.mrb[35].mxu0  ;;  %v1211_v57 = vpop.f32.mrb[35].mxu1  ;;  %v1369_v60 = vmax.f32 %v961_v46, 0.0  ;;  %v1433_v61 = vmax.f32 %v1217_v47, 0.0 }
 0x18d   : > { %v956_v58 = vadd.f32 %v3680_v8, %v955_v56  ;;  %v1212_v59 = vadd.f32 %v3680_v8, %v1211_v57  ;;  %v1367_v0 = vmax.f32 %v953_v50, 0.0  ;;  %v1431_v1 = vmax.f32 %v1209_v51, 0.0 }
 0x18e   : > { %v1370_v62 = vmax.f32 %v964_v54, 0.0  ;;  %v1434_v63 = vmax.f32 %v1220_v55, 0.0 }
 0x18f   : > { %v1368_v2 = vmax.f32 %v956_v58, 0.0  ;;  %v1432_v3 = vmax.f32 %v1212_v59, 0.0 }
 0x190   : > { %v2635_v4 = vpack.c.bf16 %v1370_v62, %v1369_v60  ;;  %v2795_v5 = vpack.c.bf16 %v1434_v63, %v1433_v61 }
 0x191   : > { %v2630_v6 = vpack.c.bf16 %v1368_v2, %v1367_v0  ;;  %v2790_v7 = vpack.c.bf16 %v1432_v3, %v1431_v1  ;;  %v3056_v9 = vpop.f32.mrb[36].mxu0  ;;  %v3120_v10 = vpop.f32.mrb[36].mxu1 }
 0x192   : > { %2883 = vst [vmem:[%s3692_s8 + $0x88] sm:$0xff] %v2635_v4   ;;  %2915 = vst [vmem:[%s3692_s8 + $0x188] sm:$0xff] %v2795_v5   ;;  %v977_v11 = vadd.f32 %v3056_v9, %v3680_v8  ;;  %v1233_v12 = vadd.f32 %v3120_v10, %v3680_v8  ;;  %v968_v13 = vpop.f32.mrb[37].mxu0  ;;  %v1224_v14 = vpop.f32.mrb[37].mxu1 }
 0x193   : > { %2882 = vst [vmem:[%s3692_s8 + $0x80] sm:$0xff] %v2630_v6   ;;  %2914 = vst [vmem:[%s3692_s8 + $0x180] sm:$0xff] %v2790_v7   ;;  %v969_v15 = vadd.f32 %v3680_v8, %v968_v13  ;;  %v1225_v16 = vadd.f32 %v3680_v8, %v1224_v14  ;;  %v3057_v17 = vpop.f32.mrb[38].mxu0  ;;  %v3121_v18 = vpop.f32.mrb[38].mxu1 }
 0x194   : > { %v980_v19 = vadd.f32 %v3057_v17, %v3680_v8  ;;  %v1236_v20 = vadd.f32 %v3121_v18, %v3680_v8  ;;  %v971_v21 = vpop.f32.mrb[39].mxu0  ;;  %v1227_v22 = vpop.f32.mrb[39].mxu1  ;;  %v1373_v25 = vmax.f32 %v977_v11, 0.0  ;;  %v1437_v26 = vmax.f32 %v1233_v12, 0.0 }
 0x195   : > { %v972_v23 = vadd.f32 %v3680_v8, %v971_v21  ;;  %v1228_v24 = vadd.f32 %v3680_v8, %v1227_v22  ;;  %v1371_v29 = vmax.f32 %v969_v15, 0.0  ;;  %v1435_v30 = vmax.f32 %v1225_v16, 0.0 }
 0x196   : > { %v1374_v27 = vmax.f32 %v980_v19, 0.0  ;;  %v1438_v28 = vmax.f32 %v1236_v20, 0.0 }
 0x197   : > { %v1372_v31 = vmax.f32 %v972_v23, 0.0  ;;  %v1436_v32 = vmax.f32 %v1228_v24, 0.0 }
 0x198   : > { %v2645_v33 = vpack.c.bf16 %v1374_v27, %v1373_v25  ;;  %v2805_v34 = vpack.c.bf16 %v1438_v28, %v1437_v26 }
 0x199   : > { %v2640_v35 = vpack.c.bf16 %v1372_v31, %v1371_v29  ;;  %v2800_v36 = vpack.c.bf16 %v1436_v32, %v1435_v30  ;;  %v3060_v37 = vpop.f32.mrb[40].mxu0  ;;  %v3124_v38 = vpop.f32.mrb[40].mxu1 }
 0x19a   : > { %2885 = vst [vmem:[%s3692_s8 + $0x98] sm:$0xff] %v2645_v33   ;;  %2917 = vst [vmem:[%s3692_s8 + $0x198] sm:$0xff] %v2805_v34   ;;  %v993_v39 = vadd.f32 %v3060_v37, %v3680_v8  ;;  %v1249_v40 = vadd.f32 %v3124_v38, %v3680_v8  ;;  %v984_v41 = vpop.f32.mrb[41].mxu0  ;;  %v1240_v42 = vpop.f32.mrb[41].mxu1 }
 0x19b   : > { %2884 = vst [vmem:[%s3692_s8 + $0x90] sm:$0xff] %v2640_v35   ;;  %2916 = vst [vmem:[%s3692_s8 + $0x190] sm:$0xff] %v2800_v36   ;;  %v985_v43 = vadd.f32 %v3680_v8, %v984_v41  ;;  %v1241_v44 = vadd.f32 %v3680_v8, %v1240_v42  ;;  %v3061_v45 = vpop.f32.mrb[42].mxu0  ;;  %v3125_v46 = vpop.f32.mrb[42].mxu1 }
 0x19c   : > { %v996_v47 = vadd.f32 %v3061_v45, %v3680_v8  ;;  %v1252_v48 = vadd.f32 %v3125_v46, %v3680_v8  ;;  %v987_v49 = vpop.f32.mrb[43].mxu0  ;;  %v1243_v50 = vpop.f32.mrb[43].mxu1  ;;  %v1377_v53 = vmax.f32 %v993_v39, 0.0  ;;  %v1441_v54 = vmax.f32 %v1249_v40, 0.0 }
 0x19d   : > { %v988_v51 = vadd.f32 %v3680_v8, %v987_v49  ;;  %v1244_v52 = vadd.f32 %v3680_v8, %v1243_v50  ;;  %v1375_v57 = vmax.f32 %v985_v43, 0.0  ;;  %v1439_v58 = vmax.f32 %v1241_v44, 0.0 }
 0x19e   : > { %v1378_v55 = vmax.f32 %v996_v47, 0.0  ;;  %v1442_v56 = vmax.f32 %v1252_v48, 0.0 }
 0x19f   : > { %v1376_v59 = vmax.f32 %v988_v51, 0.0  ;;  %v1440_v60 = vmax.f32 %v1244_v52, 0.0 }
 0x1a0   : > { %v2655_v61 = vpack.c.bf16 %v1378_v55, %v1377_v53  ;;  %v2815_v62 = vpack.c.bf16 %v1442_v56, %v1441_v54 }
 0x1a1   : > { %v2650_v63 = vpack.c.bf16 %v1376_v59, %v1375_v57  ;;  %v2810_v0 = vpack.c.bf16 %v1440_v60, %v1439_v58  ;;  %v3064_v1 = vpop.f32.mrb[44].mxu0  ;;  %v3128_v2 = vpop.f32.mrb[44].mxu1 }
 0x1a2   : > { %2887 = vst [vmem:[%s3692_s8 + $0xa8] sm:$0xff] %v2655_v61   ;;  %2919 = vst [vmem:[%s3692_s8 + $0x1a8] sm:$0xff] %v2815_v62   ;;  %v1009_v3 = vadd.f32 %v3064_v1, %v3680_v8  ;;  %v1265_v4 = vadd.f32 %v3128_v2, %v3680_v8  ;;  %v1000_v5 = vpop.f32.mrb[45].mxu0  ;;  %v1256_v6 = vpop.f32.mrb[45].mxu1 }
 0x1a3   : > { %2886 = vst [vmem:[%s3692_s8 + $0xa0] sm:$0xff] %v2650_v63   ;;  %2918 = vst [vmem:[%s3692_s8 + $0x1a0] sm:$0xff] %v2810_v0   ;;  %v1001_v7 = vadd.f32 %v3680_v8, %v1000_v5  ;;  %v1257_v9 = vadd.f32 %v3680_v8, %v1256_v6  ;;  %v3065_v10 = vpop.f32.mrb[46].mxu0  ;;  %v3129_v11 = vpop.f32.mrb[46].mxu1 }
 0x1a4   : > { %v1012_v12 = vadd.f32 %v3065_v10, %v3680_v8  ;;  %v1268_v13 = vadd.f32 %v3129_v11, %v3680_v8  ;;  %v1003_v14 = vpop.f32.mrb[47].mxu0  ;;  %v1259_v15 = vpop.f32.mrb[47].mxu1  ;;  %v1381_v18 = vmax.f32 %v1009_v3, 0.0  ;;  %v1445_v19 = vmax.f32 %v1265_v4, 0.0 }
 0x1a5   : > { %v1004_v16 = vadd.f32 %v3680_v8, %v1003_v14  ;;  %v1260_v17 = vadd.f32 %v3680_v8, %v1259_v15  ;;  %v1379_v22 = vmax.f32 %v1001_v7, 0.0  ;;  %v1443_v23 = vmax.f32 %v1257_v9, 0.0 }
 0x1a6   : > { %v1382_v20 = vmax.f32 %v1012_v12, 0.0  ;;  %v1446_v21 = vmax.f32 %v1268_v13, 0.0 }
 0x1a7   : > { %v1380_v24 = vmax.f32 %v1004_v16, 0.0  ;;  %v1444_v25 = vmax.f32 %v1260_v17, 0.0 }
 0x1a8   : > { %v2665_v26 = vpack.c.bf16 %v1382_v20, %v1381_v18  ;;  %v2825_v27 = vpack.c.bf16 %v1446_v21, %v1445_v19 }
 0x1a9   : > { %v2660_v28 = vpack.c.bf16 %v1380_v24, %v1379_v22  ;;  %v2820_v29 = vpack.c.bf16 %v1444_v25, %v1443_v23  ;;  %v3068_v30 = vpop.f32.mrb[48].mxu0  ;;  %v3132_v31 = vpop.f32.mrb[48].mxu1 }
 0x1aa   : > { %2889 = vst [vmem:[%s3692_s8 + $0xb8] sm:$0xff] %v2665_v26   ;;  %2921 = vst [vmem:[%s3692_s8 + $0x1b8] sm:$0xff] %v2825_v27   ;;  %v1025_v32 = vadd.f32 %v3068_v30, %v3680_v8  ;;  %v1281_v33 = vadd.f32 %v3132_v31, %v3680_v8  ;;  %v1016_v34 = vpop.f32.mrb[49].mxu0  ;;  %v1272_v35 = vpop.f32.mrb[49].mxu1 }
 0x1ab   : > { %2888 = vst [vmem:[%s3692_s8 + $0xb0] sm:$0xff] %v2660_v28   ;;  %2920 = vst [vmem:[%s3692_s8 + $0x1b0] sm:$0xff] %v2820_v29   ;;  %v1017_v36 = vadd.f32 %v3680_v8, %v1016_v34  ;;  %v1273_v37 = vadd.f32 %v3680_v8, %v1272_v35  ;;  %v3069_v38 = vpop.f32.mrb[50].mxu0  ;;  %v3133_v39 = vpop.f32.mrb[50].mxu1 }
 0x1ac   : > { %v1028_v40 = vadd.f32 %v3069_v38, %v3680_v8  ;;  %v1284_v41 = vadd.f32 %v3133_v39, %v3680_v8  ;;  %v1019_v42 = vpop.f32.mrb[51].mxu0  ;;  %v1275_v43 = vpop.f32.mrb[51].mxu1  ;;  %v1385_v46 = vmax.f32 %v1025_v32, 0.0  ;;  %v1449_v47 = vmax.f32 %v1281_v33, 0.0 }
 0x1ad   : > { %v1020_v44 = vadd.f32 %v3680_v8, %v1019_v42  ;;  %v1276_v45 = vadd.f32 %v3680_v8, %v1275_v43  ;;  %v1383_v50 = vmax.f32 %v1017_v36, 0.0  ;;  %v1447_v51 = vmax.f32 %v1273_v37, 0.0 }
 0x1ae   : > { %v1386_v48 = vmax.f32 %v1028_v40, 0.0  ;;  %v1450_v49 = vmax.f32 %v1284_v41, 0.0 }
 0x1af   : > { %v1384_v52 = vmax.f32 %v1020_v44, 0.0  ;;  %v1448_v53 = vmax.f32 %v1276_v45, 0.0 }
 0x1b0   : > { %v2675_v54 = vpack.c.bf16 %v1386_v48, %v1385_v46  ;;  %v2835_v55 = vpack.c.bf16 %v1450_v49, %v1449_v47 }
 0x1b1   : > { %v2670_v56 = vpack.c.bf16 %v1384_v52, %v1383_v50  ;;  %v2830_v57 = vpack.c.bf16 %v1448_v53, %v1447_v51  ;;  %v3072_v58 = vpop.f32.mrb[52].mxu0  ;;  %v3136_v59 = vpop.f32.mrb[52].mxu1 }
 0x1b2   : > { %2891 = vst [vmem:[%s3692_s8 + $0xc8] sm:$0xff] %v2675_v54   ;;  %2923 = vst [vmem:[%s3692_s8 + $0x1c8] sm:$0xff] %v2835_v55   ;;  %v1041_v60 = vadd.f32 %v3072_v58, %v3680_v8  ;;  %v1297_v61 = vadd.f32 %v3136_v59, %v3680_v8  ;;  %v1032_v62 = vpop.f32.mrb[53].mxu0  ;;  %v1288_v63 = vpop.f32.mrb[53].mxu1 }
 0x1b3   : > { %2890 = vst [vmem:[%s3692_s8 + $0xc0] sm:$0xff] %v2670_v56   ;;  %2922 = vst [vmem:[%s3692_s8 + $0x1c0] sm:$0xff] %v2830_v57   ;;  %v1033_v0 = vadd.f32 %v3680_v8, %v1032_v62  ;;  %v1289_v1 = vadd.f32 %v3680_v8, %v1288_v63  ;;  %v3073_v2 = vpop.f32.mrb[54].mxu0  ;;  %v3137_v3 = vpop.f32.mrb[54].mxu1 }
 0x1b4   : > { %v1044_v4 = vadd.f32 %v3073_v2, %v3680_v8  ;;  %v1300_v5 = vadd.f32 %v3137_v3, %v3680_v8  ;;  %v1035_v6 = vpop.f32.mrb[55].mxu0  ;;  %v1291_v7 = vpop.f32.mrb[55].mxu1  ;;  %v1389_v11 = vmax.f32 %v1041_v60, 0.0  ;;  %v1453_v12 = vmax.f32 %v1297_v61, 0.0 }
 0x1b5   : > { %v1036_v9 = vadd.f32 %v3680_v8, %v1035_v6  ;;  %v1292_v10 = vadd.f32 %v3680_v8, %v1291_v7  ;;  %v1387_v15 = vmax.f32 %v1033_v0, 0.0  ;;  %v1451_v16 = vmax.f32 %v1289_v1, 0.0 }
 0x1b6   : > { %v1390_v13 = vmax.f32 %v1044_v4, 0.0  ;;  %v1454_v14 = vmax.f32 %v1300_v5, 0.0 }
 0x1b7   : > { %v1388_v17 = vmax.f32 %v1036_v9, 0.0  ;;  %v1452_v18 = vmax.f32 %v1292_v10, 0.0 }
 0x1b8   : > { %v2685_v19 = vpack.c.bf16 %v1390_v13, %v1389_v11  ;;  %v2845_v20 = vpack.c.bf16 %v1454_v14, %v1453_v12 }
 0x1b9   : > { %v2680_v21 = vpack.c.bf16 %v1388_v17, %v1387_v15  ;;  %v2840_v22 = vpack.c.bf16 %v1452_v18, %v1451_v16  ;;  %v3076_v23 = vpop.f32.mrb[56].mxu0  ;;  %v3140_v24 = vpop.f32.mrb[56].mxu1 }
 0x1ba   : > { %2893 = vst [vmem:[%s3692_s8 + $0xd8] sm:$0xff] %v2685_v19   ;;  %2925 = vst [vmem:[%s3692_s8 + $0x1d8] sm:$0xff] %v2845_v20   ;;  %v1057_v25 = vadd.f32 %v3076_v23, %v3680_v8  ;;  %v1313_v26 = vadd.f32 %v3140_v24, %v3680_v8  ;;  %v1048_v27 = vpop.f32.mrb[57].mxu0  ;;  %v1304_v28 = vpop.f32.mrb[57].mxu1 }
 0x1bb   : > { %2892 = vst [vmem:[%s3692_s8 + $0xd0] sm:$0xff] %v2680_v21   ;;  %2924 = vst [vmem:[%s3692_s8 + $0x1d0] sm:$0xff] %v2840_v22   ;;  %v1049_v29 = vadd.f32 %v3680_v8, %v1048_v27  ;;  %v1305_v30 = vadd.f32 %v3680_v8, %v1304_v28  ;;  %v3077_v31 = vpop.f32.mrb[58].mxu0  ;;  %v3141_v32 = vpop.f32.mrb[58].mxu1 }
 0x1bc   : > { %v1060_v33 = vadd.f32 %v3077_v31, %v3680_v8  ;;  %v1316_v34 = vadd.f32 %v3141_v32, %v3680_v8  ;;  %v1051_v35 = vpop.f32.mrb[59].mxu0  ;;  %v1307_v36 = vpop.f32.mrb[59].mxu1  ;;  %v1393_v39 = vmax.f32 %v1057_v25, 0.0  ;;  %v1457_v40 = vmax.f32 %v1313_v26, 0.0 }
 0x1bd   : > { %v1052_v37 = vadd.f32 %v3680_v8, %v1051_v35  ;;  %v1308_v38 = vadd.f32 %v3680_v8, %v1307_v36  ;;  %v1391_v43 = vmax.f32 %v1049_v29, 0.0  ;;  %v1455_v44 = vmax.f32 %v1305_v30, 0.0 }
 0x1be   : > { %v1394_v41 = vmax.f32 %v1060_v33, 0.0  ;;  %v1458_v42 = vmax.f32 %v1316_v34, 0.0 }
 0x1bf   : > { %v1392_v45 = vmax.f32 %v1052_v37, 0.0  ;;  %v1456_v46 = vmax.f32 %v1308_v38, 0.0 }
 0x1c0   : > { %v2695_v47 = vpack.c.bf16 %v1394_v41, %v1393_v39  ;;  %v2855_v48 = vpack.c.bf16 %v1458_v42, %v1457_v40 }
 0x1c1   : > { %v2690_v49 = vpack.c.bf16 %v1392_v45, %v1391_v43  ;;  %v2850_v50 = vpack.c.bf16 %v1456_v46, %v1455_v44  ;;  %v3080_v51 = vpop.f32.mrb[60].mxu0  ;;  %v3144_v52 = vpop.f32.mrb[60].mxu1 }
 0x1c2   : > { %2895 = vst [vmem:[%s3692_s8 + $0xe8] sm:$0xff] %v2695_v47   ;;  %2927 = vst [vmem:[%s3692_s8 + $0x1e8] sm:$0xff] %v2855_v48   ;;  %v1073_v53 = vadd.f32 %v3080_v51, %v3680_v8  ;;  %v1329_v54 = vadd.f32 %v3144_v52, %v3680_v8  ;;  %v1064_v55 = vpop.f32.mrb[61].mxu0  ;;  %v1320_v56 = vpop.f32.mrb[61].mxu1 }
 0x1c3   : > { %2894 = vst [vmem:[%s3692_s8 + $0xe0] sm:$0xff] %v2690_v49   ;;  %2926 = vst [vmem:[%s3692_s8 + $0x1e0] sm:$0xff] %v2850_v50   ;;  %v1065_v57 = vadd.f32 %v3680_v8, %v1064_v55  ;;  %v1321_v58 = vadd.f32 %v3680_v8, %v1320_v56  ;;  %v3081_v59 = vpop.f32.mrb[62].mxu0  ;;  %v3145_v60 = vpop.f32.mrb[62].mxu1 }
 0x1c4   : > { %v1076_v61 = vadd.f32 %v3081_v59, %v3680_v8  ;;  %v1332_v62 = vadd.f32 %v3145_v60, %v3680_v8  ;;  %v1067_v63 = vpop.f32.mrb[63].mxu0  ;;  %v1323_v0 = vpop.f32.mrb[63].mxu1  ;;  %v1397_v3 = vmax.f32 %v1073_v53, 0.0  ;;  %v1461_v4 = vmax.f32 %v1329_v54, 0.0 }
 0x1c5   : > { %v1068_v1 = vadd.f32 %v3680_v8, %v1067_v63  ;;  %v1324_v2 = vadd.f32 %v3680_v8, %v1323_v0  ;;  %v1395_v7 = vmax.f32 %v1065_v57, 0.0  ;;  %v1459_v9 = vmax.f32 %v1321_v58, 0.0 }
 0x1c6   : > { %v1398_v5 = vmax.f32 %v1076_v61, 0.0  ;;  %v1462_v6 = vmax.f32 %v1332_v62, 0.0 }
 0x1c7   : > { %v1396_v10 = vmax.f32 %v1068_v1, 0.0  ;;  %v1460_v11 = vmax.f32 %v1324_v2, 0.0 }
 0x1c8   : > { %v2705_v12 = vpack.c.bf16 %v1398_v5, %v1397_v3  ;;  %v2865_v13 = vpack.c.bf16 %v1462_v6, %v1461_v4 }
 0x1c9   : > { %v2700_v8 = vpack.c.bf16 %v1396_v10, %v1395_v7  ;;  %v2860_v14 = vpack.c.bf16 %v1460_v11, %v1459_v9 }
 0x1ca   : > { %2897 = vst [vmem:[%s3692_s8 + $0xf8] sm:$0xff] %v2705_v12   ;;  %2929 = vst [vmem:[%s3692_s8 + $0x1f8] sm:$0xff] %v2865_v13  }
 0x1cb   : > { %2896 = vst [vmem:[%s3692_s8 + $0xf0] sm:$0xff] %v2700_v8   ;;  %2928 = vst [vmem:[%s3692_s8 + $0x1f0] sm:$0xff] %v2860_v14  }
 0x1cc   : > { %3366 = shalt.err (!%p3363_p7)
}
 0x1cd   : > { %s3367_s30 = scalar_lea.hbm %s3879_s16, 8192  ;;  %s3371_s10 = scalar_lea.hbm %s3932_s3, 16384 }
 0x1ce   : > { %p3368_p9 = scmp.ne.s32.totalorder %s3879_s16, %s3367_s30  ;;  %p3372_p5 = scmp.lt.u32.totalorder %s3879_s16, %s3932_s3 }
 0x1cf   : > { %p3373_p11 = scmp.lt.u32.totalorder %s3371_s10, %s3367_s30  ;;  %p3375_p4 = scmp.lt.u32.totalorder %s3367_s30, %s3879_s16 }
 0x1d0   : > { %p3369_p1 = pnand %p3368_p9, %p3546_p12 }
 0x1d1   : > { %p3374_p2 = por %p3373_p11, %p3372_p5 }
 0x1d2   : > { %p3370_p0 = pneg %p3369_p1 }
 0x1d3   : > { %p3376_p6 = por %p3375_p4, %p3374_p2 }
 0x1d5   : > { %p3377_p8 = pnand %p3376_p6, %p3370_p0 }
 0x1d7   : > { %3380 = shalt.err (!%p3377_p8)
}
 0x1d8   : > { %s3430_s20 = smov 64   ;;  %s3431_s8 = smov 4  }
 0x1d9   : > { %3168 = dma.vmem_to_hbm [thread:$0]  (%p3546_p12), %s3881_s4, 8192, %s3879_s16, %s2104_s11, %s3430_s20, %s3430_s20, %s3431_s8  }
 0x1da PF: > { %s2132_s9 = sand.u32 1, %s3411_s12   ;;  %p3947_p10 = scmp.ne.s32.totalorder %s3937_s19, 0 }
 0x1db   : > { %p3948_p13 = scmp.ge.s32.totalorder %s3423_s15, 2  ;;  %s2133_s25 = scalar_lea.sflag [#allocation4], %s2132_s9 }
 0x1dd   : > { %p3179_p3 = pnand %p3948_p13, %p3947_p10 }
 0x1df   : > { %3406 = dma.done.wait (!%p3179_p3), %s2133_s25, 8192  }
 0x1e0   : > { %3408 = vsyncadd (!%p3179_p3), %s2133_s25, 4294959104  ;;  %p17_p7 = scmp.ge.s32.totalorder %s3508_s24, 4   ;;  %s3949_s12 = smov %s3415_s13 }
 0x1e1   : > { %s3950_s13 = smov %s3419_s14  ;;  %s3951_s14 = smov %s3542_s17 }
 0x1e2   : > { %s3952_s15 = smov %s3508_s24  ;;  %19 = sbr.rel (!%p17_p7) target bundleno = 6 (0x6), region = 81 }
 0x1e9   :  { %2138 = vsyncpa [#allocation3], 1 }
 0x1ea   :  { %2140 = vsyncpa [#allocation3 + $0x1], 1 }
 0x1eb   :  { %2141 = vsyncpa [#allocation6], 1 }
 0x1ec   :  { %2142 = vsyncpa [#allocation4], 1 }
 0x1ed   :  { %2144 = vsyncpa [#allocation4 + $0x1], 1 }

</bundles_post_ra>
